<compile_context>
chip_gen: v5e
topology: v5e:2x2
jax: 0.10.0
libtpu: 0.0.40
codegen_flags: <defaults>
</compile_context>

<pallas_src>
import jax
import jax.numpy as jnp
from jax.experimental import pallas as pl
from jax.experimental.pallas import tpu as pltpu

# ----------------------- problem sizes (small, synthetic) -----------------------
BATCH = 2           # number of graphs in the DGL batch
NODE_COUNT = 8      # nodes per graph (g.batch_num_nodes()[0])
IN_DIM = 6          # raw node feature dim
LATENT = 32         # latent_feat
EMB = 16            # embedding_size
LOCAL_STEPS = 2
GLOBAL_STEPS = 4
TOTAL_NODES = BATCH * NODE_COUNT


def adam_gcn_kernel(x_ref, a_ref, wf_ref, b3_ref, wg_ref, wh_ref,
                    we_ref, be_ref, out_ref):
    """Single invocation: whole batch resident in VMEM."""
    # --- hoist weight/bias loads + bias broadcasts out of the unrolled loops ---
    wf = wf_ref[...]                                   # (IN_DIM, LATENT)
    wg = wg_ref[...]                                   # (LATENT, LATENT)
    wh = wh_ref[...]                                   # (LATENT, LATENT)
    we = we_ref[...]                                   # (LATENT, EMB)
    b3 = b3_ref[...]                                   # rows: bf, bg, bh
    bf = jnp.broadcast_to(b3[0:1, :], (TOTAL_NODES, LATENT))
    bg = jnp.broadcast_to(b3[1:2, :], (TOTAL_NODES, LATENT))
    bh = jnp.broadcast_to(b3[2:3, :], (TOTAL_NODES, LATENT))
    be = be_ref[...]                                   # (1, EMB)

    # Per-graph normalized adjacency blocks, loaded once and reused in every step.
    a_blocks = [a_ref[b] for b in range(BATCH)]        # each (NODE_COUNT, NODE_COUNT)

    def spmm(h):
        # Block-diagonal A_hat @ h: one tiny (N,N)@(N,L) matmul per graph.
        # Slices at multiples of NODE_COUNT==8 are whole-sublane-tile aligned.
        outs = [jnp.dot(a_blocks[b],
                        h[b * NODE_COUNT:(b + 1) * NODE_COUNT, :],
                        preferred_element_type=jnp.float32)
                for b in range(BATCH)]
        return jnp.concatenate(outs, axis=0)           # (TOTAL_NODES, LATENT)

    # x = relu(f(x)) -- one whole-batch MXU push.
    h = jnp.dot(x_ref[...], wf, preferred_element_type=jnp.float32)
    h = jnp.maximum(h + bf, 0.0)                       # (TOTAL_NODES, LATENT)

    # local steps: x += relu(GraphConv_g(g, x))
    for _ in range(LOCAL_STEPS):
        conv = jnp.dot(spmm(h), wg, preferred_element_type=jnp.float32) + bg
        h = h + jnp.maximum(conv, 0.0)

    # global steps: x += relu(GraphConv_h(g, x))
    for _ in range(GLOBAL_STEPS):
        conv = jnp.dot(spmm(h), wh, preferred_element_type=jnp.float32) + bh
        h = h + jnp.maximum(conv, 0.0)

    # 'node' aggregation: node 0 of every graph (static 8-aligned row slices,
    # no strided sublane gather).
    pooled = jnp.concatenate(
        [h[b * NODE_COUNT:b * NODE_COUNT + 1, :] for b in range(BATCH)],
        axis=0)                                        # (BATCH, LATENT)

    out = jnp.dot(pooled, we, preferred_element_type=jnp.float32) + be
    out_ref[...] = jnp.maximum(out, 0.0)               # (BATCH, EMB)


@jax.jit
def adam_gcn_forward(x_flat, a_blk, wf, b3, wg, wh, we, be):
    """x_flat: (BATCH*NODE_COUNT, IN_DIM) — DGL-style stacked node features.
    a_blk: (BATCH, NODE_COUNT, NODE_COUNT) per-graph normalized adjacency."""
    vmem = pl.BlockSpec(memory_space=pltpu.MemorySpace.VMEM)
    return pl.pallas_call(
        adam_gcn_kernel,
        out_shape=jax.ShapeDtypeStruct((BATCH, EMB), jnp.float32),
        in_specs=[vmem] * 8,
        out_specs=vmem,
    )(x_flat, a_blk, wf, b3, wg, wh, we, be)


def build_norm_adj_blocks(batch, n):
    """Per-graph symmetric-normalized adjacency blocks (ring + chord + self loops).

    Each graph gets a slightly different chord so the per-graph blocking in the
    kernel is actually exercised.
    """
    idx = jnp.arange(n)
    blocks = []
    for b in range(batch):
        adj = jnp.zeros((n, n), jnp.float32)
        adj = adj.at[idx, (idx + 1) % n].set(1.0)
        adj = adj.at[(idx + 1) % n, idx].set(1.0)
        u, v = 0, (2 + b) % n                          # graph-dependent chord
        adj = adj.at[u, v].set(1.0)
        adj = adj.at[v, u].set(1.0)
        adj = adj.at[idx, idx].set(1.0)                # self loops (avoid zero degree)
        # TODO(synk): DGL GraphConv(norm='both') does not add self loops itself;
        # this mirrors the synthetic graph construction, not DGL defaults.
        deg = adj.sum(axis=1)
        dinv = 1.0 / jnp.sqrt(deg)
        blocks.append(dinv[:, None] * adj * dinv[None, :])
    return jnp.stack(blocks, axis=0)                   # (batch, n, n)


def reference_forward(x_flat, a_blk, wf, bf, wg, bg, wh, bh, we, be):
    """Plain-JAX reference mirroring the PyTorch module semantics."""
    h = jax.nn.relu(x_flat @ wf + bf)                  # (B*N, LATENT)
    h3 = h.reshape(BATCH, NODE_COUNT, LATENT)
    for _ in range(LOCAL_STEPS):
        h3 = h3 + jax.nn.relu(jnp.einsum('bij,bjk->bik', a_blk, h3) @ wg + bg)
    for _ in range(GLOBAL_STEPS):
        h3 = h3 + jax.nn.relu(jnp.einsum('bij,bjk->bik', a_blk, h3) @ wh + bh)
    pooled = h3[:, 0, :]                               # 'node' aggregation
    return jax.nn.relu(pooled @ we + be)


if __name__ == "__main__":
    key = jax.random.PRNGKey(0)
    ks = jax.random.split(key, 10)

    # Deterministic synthetic parameters (shapes follow the module's __init__).
    # nn.Linear weights are stored (out, in) in torch; we pre-transpose to (in, out).
    x = jax.random.normal(ks[0], (TOTAL_NODES, IN_DIM), jnp.float32)
    wf = jax.random.normal(ks[1], (IN_DIM, LATENT), jnp.float32) * 0.2
    bf = jax.random.normal(ks[2], (1, LATENT), jnp.float32) * 0.1
    wg = jax.random.normal(ks[3], (LATENT, LATENT), jnp.float32) * 0.2
    bg = jax.random.normal(ks[4], (1, LATENT), jnp.float32) * 0.1
    wh = jax.random.normal(ks[5], (LATENT, LATENT), jnp.float32) * 0.2
    bh = jax.random.normal(ks[6], (1, LATENT), jnp.float32) * 0.1
    we = jax.random.normal(ks[7], (LATENT, EMB), jnp.float32) * 0.2
    be = jax.random.normal(ks[8], (1, EMB), jnp.float32) * 0.1

    b3 = jnp.concatenate([bf, bg, bh], axis=0)         # packed (3, LATENT) bias block
    a_blk = build_norm_adj_blocks(BATCH, NODE_COUNT)   # (BATCH, N, N)

    out = adam_gcn_forward(x, a_blk, wf, b3, wg, wh, we, be)
    out = jax.block_until_ready(out)

    ref = reference_forward(x, a_blk, wf, bf, wg, bg, wh, bh, we, be)
    assert out.shape == (BATCH, EMB)
    assert jnp.allclose(out, ref, atol=1e-4, rtol=1e-4), "mismatch vs reference"

    # TODO(synk): 'attention'/'max'/'mean' aggregation branches (dgl.mean_nodes /
    # dgl.max_nodes) not exercised; only the default 'node' aggregation is implemented.
    print("KERNEL_OK")
</pallas_src>

<mosaic_0001>
module attributes {stable_mosaic.version = 11 : i64} {
  func.func @adam_gcn_kernel(%arg0: memref<16x6xf32, #tpu.memory_space<vmem>>, %arg1: memref<2x8x8xf32, #tpu.memory_space<vmem>>, %arg2: memref<6x32xf32, #tpu.memory_space<vmem>>, %arg3: memref<3x32xf32, #tpu.memory_space<vmem>>, %arg4: memref<32x32xf32, #tpu.memory_space<vmem>>, %arg5: memref<32x32xf32, #tpu.memory_space<vmem>>, %arg6: memref<32x16xf32, #tpu.memory_space<vmem>>, %arg7: memref<1x16xf32, #tpu.memory_space<vmem>>, %arg8: memref<2x16xf32, #tpu.memory_space<vmem>>) attributes {dimension_semantics = [], scalar_prefetch = 0 : i64, scratch_operands = 0 : i64, tpu.core_type = #tpu.core_type<tc>} {
    %c0 = arith.constant 0 : index
    %c0_0 = arith.constant 0 : index
    %0 = vector.load %arg2[%c0, %c0_0] : memref<6x32xf32, #tpu.memory_space<vmem>>, vector<6x32xf32>
    %c0_1 = arith.constant 0 : index
    %c0_2 = arith.constant 0 : index
    %1 = vector.load %arg4[%c0_1, %c0_2] : memref<32x32xf32, #tpu.memory_space<vmem>>, vector<32x32xf32>
    %c0_3 = arith.constant 0 : index
    %c0_4 = arith.constant 0 : index
    %2 = vector.load %arg5[%c0_3, %c0_4] : memref<32x32xf32, #tpu.memory_space<vmem>>, vector<32x32xf32>
    %c0_5 = arith.constant 0 : index
    %c0_6 = arith.constant 0 : index
    %3 = vector.load %arg6[%c0_5, %c0_6] : memref<32x16xf32, #tpu.memory_space<vmem>>, vector<32x16xf32>
    %c0_7 = arith.constant 0 : index
    %c0_8 = arith.constant 0 : index
    %4 = vector.load %arg3[%c0_7, %c0_8] : memref<3x32xf32, #tpu.memory_space<vmem>>, vector<3x32xf32>
    %5 = vector.extract_strided_slice %4 {offsets = [0, 0], sizes = [1, 32], strides = [1, 1]} : vector<3x32xf32> to vector<1x32xf32>
    %6 = vector.shape_cast %5 : vector<1x32xf32> to vector<1x32xf32>
    %7 = vector.broadcast %6 : vector<1x32xf32> to vector<16x32xf32>
    %8 = vector.extract_strided_slice %4 {offsets = [1, 0], sizes = [1, 32], strides = [1, 1]} : vector<3x32xf32> to vector<1x32xf32>
    %9 = vector.shape_cast %8 : vector<1x32xf32> to vector<1x32xf32>
    %10 = vector.broadcast %9 : vector<1x32xf32> to vector<16x32xf32>
    %11 = vector.extract_strided_slice %4 {offsets = [2, 0], sizes = [1, 32], strides = [1, 1]} : vector<3x32xf32> to vector<1x32xf32>
    %12 = vector.shape_cast %11 : vector<1x32xf32> to vector<1x32xf32>
    %13 = vector.broadcast %12 : vector<1x32xf32> to vector<16x32xf32>
    %c0_9 = arith.constant 0 : index
    %c0_10 = arith.constant 0 : index
    %14 = vector.load %arg7[%c0_9, %c0_10] : memref<1x16xf32, #tpu.memory_space<vmem>>, vector<1x16xf32>
    %c0_11 = arith.constant 0 : index
    %c0_12 = arith.constant 0 : index
    %c0_13 = arith.constant 0 : index
    %15 = vector.load %arg1[%c0_11, %c0_12, %c0_13] : memref<2x8x8xf32, #tpu.memory_space<vmem>>, vector<1x8x8xf32>
    %16 = vector.shape_cast %15 : vector<1x8x8xf32> to vector<8x8xf32>
    %c1 = arith.constant 1 : index
    %c0_14 = arith.constant 0 : index
    %c0_15 = arith.constant 0 : index
    %17 = vector.load %arg1[%c1, %c0_14, %c0_15] : memref<2x8x8xf32, #tpu.memory_space<vmem>>, vector<1x8x8xf32>
    %18 = vector.shape_cast %17 : vector<1x8x8xf32> to vector<8x8xf32>
    %c0_16 = arith.constant 0 : index
    %c0_17 = arith.constant 0 : index
    %19 = vector.load %arg0[%c0_16, %c0_17] : memref<16x6xf32, #tpu.memory_space<vmem>>, vector<16x6xf32>
    %cst = arith.constant dense<0.000000e+00> : vector<16x32xf32>
    %20 = tpu.matmul %19, %0, %cst {dimension_numbers = #tpu.dot_dimension_numbers<[1], [0], [0], [1], [0, 0, 1, 1], [], []>} : vector<16x6xf32>, vector<6x32xf32>, vector<16x32xf32> -> vector<16x32xf32>
    %21 = arith.addf %20, %7 : vector<16x32xf32>
    %cst_18 = arith.constant 0.000000e+00 : f32
    %22 = vector.broadcast %cst_18 : f32 to vector<16x32xf32>
    %23 = arith.maximumf %21, %22 : vector<16x32xf32>
    %24 = vector.extract_strided_slice %23 {offsets = [0, 0], sizes = [8, 32], strides = [1, 1]} : vector<16x32xf32> to vector<8x32xf32>
    %cst_19 = arith.constant dense<0.000000e+00> : vector<8x32xf32>
    %25 = tpu.matmul %16, %24, %cst_19 {dimension_numbers = #tpu.dot_dimension_numbers<[1], [0], [0], [1], [0, 0, 1, 1], [], []>} : vector<8x8xf32>, vector<8x32xf32>, vector<8x32xf32> -> vector<8x32xf32>
    %26 = vector.extract_strided_slice %23 {offsets = [8, 0], sizes = [8, 32], strides = [1, 1]} : vector<16x32xf32> to vector<8x32xf32>
    %cst_20 = arith.constant dense<0.000000e+00> : vector<8x32xf32>
    %27 = tpu.matmul %18, %26, %cst_20 {dimension_numbers = #tpu.dot_dimension_numbers<[1], [0], [0], [1], [0, 0, 1, 1], [], []>} : vector<8x8xf32>, vector<8x32xf32>, vector<8x32xf32> -> vector<8x32xf32>
    %28 = tpu.concatenate %25, %27 in 0 : vector<8x32xf32>, vector<8x32xf32> -> vector<16x32xf32>
    %cst_21 = arith.constant dense<0.000000e+00> : vector<16x32xf32>
    %29 = tpu.matmul %28, %1, %cst_21 {dimension_numbers = #tpu.dot_dimension_numbers<[1], [0], [0], [1], [0, 0, 1, 1], [], []>} : vector<16x32xf32>, vector<32x32xf32>, vector<16x32xf32> -> vector<16x32xf32>
    %30 = arith.addf %29, %10 : vector<16x32xf32>
    %cst_22 = arith.constant 0.000000e+00 : f32
    %31 = vector.broadcast %cst_22 : f32 to vector<16x32xf32>
    %32 = arith.maximumf %30, %31 : vector<16x32xf32>
    %33 = arith.addf %23, %32 : vector<16x32xf32>
    %34 = vector.extract_strided_slice %33 {offsets = [0, 0], sizes = [8, 32], strides = [1, 1]} : vector<16x32xf32> to vector<8x32xf32>
    %cst_23 = arith.constant dense<0.000000e+00> : vector<8x32xf32>
    %35 = tpu.matmul %16, %34, %cst_23 {dimension_numbers = #tpu.dot_dimension_numbers<[1], [0], [0], [1], [0, 0, 1, 1], [], []>} : vector<8x8xf32>, vector<8x32xf32>, vector<8x32xf32> -> vector<8x32xf32>
    %36 = vector.extract_strided_slice %33 {offsets = [8, 0], sizes = [8, 32], strides = [1, 1]} : vector<16x32xf32> to vector<8x32xf32>
    %cst_24 = arith.constant dense<0.000000e+00> : vector<8x32xf32>
    %37 = tpu.matmul %18, %36, %cst_24 {dimension_numbers = #tpu.dot_dimension_numbers<[1], [0], [0], [1], [0, 0, 1, 1], [], []>} : vector<8x8xf32>, vector<8x32xf32>, vector<8x32xf32> -> vector<8x32xf32>
    %38 = tpu.concatenate %35, %37 in 0 : vector<8x32xf32>, vector<8x32xf32> -> vector<16x32xf32>
    %cst_25 = arith.constant dense<0.000000e+00> : vector<16x32xf32>
    %39 = tpu.matmul %38, %1, %cst_25 {dimension_numbers = #tpu.dot_dimension_numbers<[1], [0], [0], [1], [0, 0, 1, 1], [], []>} : vector<16x32xf32>, vector<32x32xf32>, vector<16x32xf32> -> vector<16x32xf32>
    %40 = arith.addf %39, %10 : vector<16x32xf32>
    %cst_26 = arith.constant 0.000000e+00 : f32
    %41 = vector.broadcast %cst_26 : f32 to vector<16x32xf32>
    %42 = arith.maximumf %40, %41 : vector<16x32xf32>
    %43 = arith.addf %33, %42 : vector<16x32xf32>
    %44 = vector.extract_strided_slice %43 {offsets = [0, 0], sizes = [8, 32], strides = [1, 1]} : vector<16x32xf32> to vector<8x32xf32>
    %cst_27 = arith.constant dense<0.000000e+00> : vector<8x32xf32>
    %45 = tpu.matmul %16, %44, %cst_27 {dimension_numbers = #tpu.dot_dimension_numbers<[1], [0], [0], [1], [0, 0, 1, 1], [], []>} : vector<8x8xf32>, vector<8x32xf32>, vector<8x32xf32> -> vector<8x32xf32>
    %46 = vector.extract_strided_slice %43 {offsets = [8, 0], sizes = [8, 32], strides = [1, 1]} : vector<16x32xf32> to vector<8x32xf32>
    %cst_28 = arith.constant dense<0.000000e+00> : vector<8x32xf32>
    %47 = tpu.matmul %18, %46, %cst_28 {dimension_numbers = #tpu.dot_dimension_numbers<[1], [0], [0], [1], [0, 0, 1, 1], [], []>} : vector<8x8xf32>, vector<8x32xf32>, vector<8x32xf32> -> vector<8x32xf32>
    %48 = tpu.concatenate %45, %47 in 0 : vector<8x32xf32>, vector<8x32xf32> -> vector<16x32xf32>
    %cst_29 = arith.constant dense<0.000000e+00> : vector<16x32xf32>
    %49 = tpu.matmul %48, %2, %cst_29 {dimension_numbers = #tpu.dot_dimension_numbers<[1], [0], [0], [1], [0, 0, 1, 1], [], []>} : vector<16x32xf32>, vector<32x32xf32>, vector<16x32xf32> -> vector<16x32xf32>
    %50 = arith.addf %49, %13 : vector<16x32xf32>
    %cst_30 = arith.constant 0.000000e+00 : f32
    %51 = vector.broadcast %cst_30 : f32 to vector<16x32xf32>
    %52 = arith.maximumf %50, %51 : vector<16x32xf32>
    %53 = arith.addf %43, %52 : vector<16x32xf32>
    %54 = vector.extract_strided_slice %53 {offsets = [0, 0], sizes = [8, 32], strides = [1, 1]} : vector<16x32xf32> to vector<8x32xf32>
    %cst_31 = arith.constant dense<0.000000e+00> : vector<8x32xf32>
    %55 = tpu.matmul %16, %54, %cst_31 {dimension_numbers = #tpu.dot_dimension_numbers<[1], [0], [0], [1], [0, 0, 1, 1], [], []>} : vector<8x8xf32>, vector<8x32xf32>, vector<8x32xf32> -> vector<8x32xf32>
    %56 = vector.extract_strided_slice %53 {offsets = [8, 0], sizes = [8, 32], strides = [1, 1]} : vector<16x32xf32> to vector<8x32xf32>
    %cst_32 = arith.constant dense<0.000000e+00> : vector<8x32xf32>
    %57 = tpu.matmul %18, %56, %cst_32 {dimension_numbers = #tpu.dot_dimension_numbers<[1], [0], [0], [1], [0, 0, 1, 1], [], []>} : vector<8x8xf32>, vector<8x32xf32>, vector<8x32xf32> -> vector<8x32xf32>
    %58 = tpu.concatenate %55, %57 in 0 : vector<8x32xf32>, vector<8x32xf32> -> vector<16x32xf32>
    %cst_33 = arith.constant dense<0.000000e+00> : vector<16x32xf32>
    %59 = tpu.matmul %58, %2, %cst_33 {dimension_numbers = #tpu.dot_dimension_numbers<[1], [0], [0], [1], [0, 0, 1, 1], [], []>} : vector<16x32xf32>, vector<32x32xf32>, vector<16x32xf32> -> vector<16x32xf32>
    %60 = arith.addf %59, %13 : vector<16x32xf32>
    %cst_34 = arith.constant 0.000000e+00 : f32
    %61 = vector.broadcast %cst_34 : f32 to vector<16x32xf32>
    %62 = arith.maximumf %60, %61 : vector<16x32xf32>
    %63 = arith.addf %53, %62 : vector<16x32xf32>
    %64 = vector.extract_strided_slice %63 {offsets = [0, 0], sizes = [8, 32], strides = [1, 1]} : vector<16x32xf32> to vector<8x32xf32>
    %cst_35 = arith.constant dense<0.000000e+00> : vector<8x32xf32>
    %65 = tpu.matmul %16, %64, %cst_35 {dimension_numbers = #tpu.dot_dimension_numbers<[1], [0], [0], [1], [0, 0, 1, 1], [], []>} : vector<8x8xf32>, vector<8x32xf32>, vector<8x32xf32> -> vector<8x32xf32>
    %66 = vector.extract_strided_slice %63 {offsets = [8, 0], sizes = [8, 32], strides = [1, 1]} : vector<16x32xf32> to vector<8x32xf32>
    %cst_36 = arith.constant dense<0.000000e+00> : vector<8x32xf32>
    %67 = tpu.matmul %18, %66, %cst_36 {dimension_numbers = #tpu.dot_dimension_numbers<[1], [0], [0], [1], [0, 0, 1, 1], [], []>} : vector<8x8xf32>, vector<8x32xf32>, vector<8x32xf32> -> vector<8x32xf32>
    %68 = tpu.concatenate %65, %67 in 0 : vector<8x32xf32>, vector<8x32xf32> -> vector<16x32xf32>
    %cst_37 = arith.constant dense<0.000000e+00> : vector<16x32xf32>
    %69 = tpu.matmul %68, %2, %cst_37 {dimension_numbers = #tpu.dot_dimension_numbers<[1], [0], [0], [1], [0, 0, 1, 1], [], []>} : vector<16x32xf32>, vector<32x32xf32>, vector<16x32xf32> -> vector<16x32xf32>
    %70 = arith.addf %69, %13 : vector<16x32xf32>
    %cst_38 = arith.constant 0.000000e+00 : f32
    %71 = vector.broadcast %cst_38 : f32 to vector<16x32xf32>
    %72 = arith.maximumf %70, %71 : vector<16x32xf32>
    %73 = arith.addf %63, %72 : vector<16x32xf32>
    %74 = vector.extract_strided_slice %73 {offsets = [0, 0], sizes = [8, 32], strides = [1, 1]} : vector<16x32xf32> to vector<8x32xf32>
    %cst_39 = arith.constant dense<0.000000e+00> : vector<8x32xf32>
    %75 = tpu.matmul %16, %74, %cst_39 {dimension_numbers = #tpu.dot_dimension_numbers<[1], [0], [0], [1], [0, 0, 1, 1], [], []>} : vector<8x8xf32>, vector<8x32xf32>, vector<8x32xf32> -> vector<8x32xf32>
    %76 = vector.extract_strided_slice %73 {offsets = [8, 0], sizes = [8, 32], strides = [1, 1]} : vector<16x32xf32> to vector<8x32xf32>
    %cst_40 = arith.constant dense<0.000000e+00> : vector<8x32xf32>
    %77 = tpu.matmul %18, %76, %cst_40 {dimension_numbers = #tpu.dot_dimension_numbers<[1], [0], [0], [1], [0, 0, 1, 1], [], []>} : vector<8x8xf32>, vector<8x32xf32>, vector<8x32xf32> -> vector<8x32xf32>
    %78 = tpu.concatenate %75, %77 in 0 : vector<8x32xf32>, vector<8x32xf32> -> vector<16x32xf32>
    %cst_41 = arith.constant dense<0.000000e+00> : vector<16x32xf32>
    %79 = tpu.matmul %78, %2, %cst_41 {dimension_numbers = #tpu.dot_dimension_numbers<[1], [0], [0], [1], [0, 0, 1, 1], [], []>} : vector<16x32xf32>, vector<32x32xf32>, vector<16x32xf32> -> vector<16x32xf32>
    %80 = arith.addf %79, %13 : vector<16x32xf32>
    %cst_42 = arith.constant 0.000000e+00 : f32
    %81 = vector.broadcast %cst_42 : f32 to vector<16x32xf32>
    %82 = arith.maximumf %80, %81 : vector<16x32xf32>
    %83 = arith.addf %73, %82 : vector<16x32xf32>
    %84 = vector.extract_strided_slice %83 {offsets = [0, 0], sizes = [1, 32], strides = [1, 1]} : vector<16x32xf32> to vector<1x32xf32>
    %85 = vector.extract_strided_slice %83 {offsets = [8, 0], sizes = [1, 32], strides = [1, 1]} : vector<16x32xf32> to vector<1x32xf32>
    %86 = tpu.concatenate %84, %85 in 0 : vector<1x32xf32>, vector<1x32xf32> -> vector<2x32xf32>
    %cst_43 = arith.constant dense<0.000000e+00> : vector<2x16xf32>
    %87 = tpu.matmul %86, %3, %cst_43 {dimension_numbers = #tpu.dot_dimension_numbers<[1], [0], [0], [1], [0, 0, 1, 1], [], []>} : vector<2x32xf32>, vector<32x16xf32>, vector<2x16xf32> -> vector<2x16xf32>
    %88 = vector.broadcast %14 : vector<1x16xf32> to vector<2x16xf32>
    %89 = arith.addf %87, %88 : vector<2x16xf32>
    %cst_44 = arith.constant 0.000000e+00 : f32
    %90 = vector.broadcast %cst_44 : f32 to vector<2x16xf32>
    %91 = arith.maximumf %89, %90 : vector<2x16xf32>
    %c0_45 = arith.constant 0 : index
    %c0_46 = arith.constant 0 : index
    %92 = vector.load %arg8[%c0_45, %c0_46] : memref<2x16xf32, #tpu.memory_space<vmem>>, vector<2x16xf32>
    tpu.vector_store %arg8[%c0_45, %c0_46], %91 {strides = array<i32>} : memref<2x16xf32, #tpu.memory_space<vmem>>, vector<2x16xf32>,
    return
  }
}

</mosaic_0001>

<bundles_post_ra>
// kernel: adam_gcn_forward.1
= control target key start
LH: loop header
LB: loop body
LE: loop exit
PB: predicated region body
PF: predicated region fallthrough
CT: control target
= control target key end

     0   :  { %13 = vsyncpa [#allocation3], 0  ;;  %s835_s0 = inlined_call_operand.vmem [shape: f32[16,6], index: 0, kind: input, shape index: {}]   ;;  %s836_s1 = inlined_call_operand.vmem [shape: f32[2,8,8], index: 1, kind: input, shape index: {}]   ;;  %s837_s2 = inlined_call_operand.vmem [shape: f32[6,32], index: 2, kind: input, shape index: {}]   ;;  %s838_s3 = inlined_call_operand.vmem [shape: f32[3,32], index: 3, kind: input, shape index: {}]   ;;  %s839_s4 = inlined_call_operand.vmem [shape: f32[32,32], index: 4, kind: input, shape index: {}]   ;;  %s840_s5 = inlined_call_operand.hbm [shape: f32[32,32], index: 5, kind: input, shape index: {}]   ;;  %s841_s6 = inlined_call_operand.vmem [shape: f32[32,16], index: 6, kind: input, shape index: {}]   ;;  %s842_s7 = inlined_call_operand.vmem [shape: f32[1,16], index: 7, kind: input, shape index: {}]   ;;  %s843_s8 = inlined_call_operand.hbm [shape: f32[2,16], index: 8, kind: output, shape index: {}]  }
   0x1   :  { %14 = vsyncpa [#allocation4], 0  ;;  %s29_s29 = sshll.u32 %s840_s5, 4  ;;  %s689_s30 = smov [#allocation2]   ;;  %s30_s29 = int_to_ptr.hbm [resolvable:$true] %s29_s29 }
   0x2   :  { %s31_s9 = sshll.u32 %s689_s30, 4  ;;  %s690_s10 = smov 128   ;;  %s32_s9 = int_to_ptr.vmem [resolvable:$true] %s31_s9 }
   0x3   :  { %s691_s11 = smov 8  }
   0x4   :  { %37 = dma.hbm_to_vmem [thread:$0]  %s30_s29, 512, %s32_s9, [#allocation3], %s690_s10, %s690_s10, %s691_s11  }
   0x5   :  { %685 = dma.done.wait [#allocation3], 512  }
   0x6   :  { %686 = vsyncadd [#allocation3], 4294966784  ;;  %vm76_vm0 = vcmask 1045504   ;;  %vm69_vm1 = vcmask 48128   ;;  %v46_v0 = vld [vmem:[%s837_s2] sm:$0x3f] }
   0x7   :  { %v67_v1 = vld [vmem:[%s835_s0] sm:$0xff]  ;;  %v68_v2 = vld [vmem:[%s835_s0 + $0x8] sm:$0xff]  ;;  %603 = vmatpush.msk.msra.mxu0 %vm76_vm0, %v46_v0  ;;  %631 = vmatpush.msk.msra.mxu2 %vm76_vm0, %v46_v0  ;;  %v50_v3 = vld [vmem:[%s839_s4 + $0x18] sm:$0xff]  ;;  %vm105_vm2 = vcmask 64512   ;;  %vm152_vm3 = vcmask 261120   ;;  %vm554_vm4 = vcmask 1040384  }
   0x8   :  { %604 = vmatmul.msk.f32.vlgmr.msra.gmra.mxu0 %vm69_vm1, %v67_v1  ;;  %605 = vmatmul.msk.f32.vlgmr.msra.gmra.mxu2 %vm69_vm1, %v68_v2  ;;  %v49_v4 = vld [vmem:[%s839_s4 + $0x10] sm:$0xff]  ;;  %v48_v5 = vld [vmem:[%s839_s4 + $0x8] sm:$0xff]  ;;  %v762_v6 = vld [vmem:[%s838_s3] sm:$0x7]  ;;  %s592_s16 = sshll.u32 %s843_s8, 4  ;;  %vm583_vm5 = vcmask 123904   ;;  %s593_s16 = int_to_ptr.hbm [resolvable:$true] %s592_s16 }
   0x9   :  { %171 = vmatpush.msra.mxu3 %v50_v3  ;;  %244 = vmatpush.msrb.mxu0 %v50_v3  ;;  %v60_v7 = vperm.slane %v762_v6, 0  ;;  %v768_v11 = vld [vmem:[%s836_s1] sm:$0xff]  ;;  %v775_v15 = vld [vmem:[%s836_s1 + $0x8] sm:$0xff]  ;;  %v61_v19 = vperm.slane %v762_v6, 1  ;;  %v54_v30 = vld [vmem:[#allocation2 + $0x18] sm:$0xff]  ;;  %v62_v44 = vperm.slane %v762_v6, 2 }
   0xa   :  { %v47_v16 = vld [vmem:[%s839_s4] sm:$0xff]  ;;  %v53_v31 = vld [vmem:[#allocation2 + $0x10] sm:$0xff]  ;;  %v52_v32 = vld [vmem:[#allocation2 + $0x8] sm:$0xff] }
   0xb   :  { %172 = vmatpush.msra.mxu3 %v49_v4  ;;  %245 = vmatpush.msrb.mxu0 %v49_v4  ;;  %v51_v41 = vld [vmem:[#allocation2] sm:$0xff] }
   0xd   :  { %173 = vmatpush.msra.mxu3 %v48_v5  ;;  %246 = vmatpush.msrb.mxu0 %v48_v5 }
   0xf   :  { %174 = vmatpush.msra.mxu3 %v47_v16  ;;  %247 = vmatpush.msrb.mxu0 %v47_v16 }
  0x11   :  { %317 = vmatpush.msrb.mxu3 %v54_v30  ;;  %390 = vmatpush.msra.mxu0 %v54_v30 }
  0x13   :  { %318 = vmatpush.msrb.mxu3 %v53_v31  ;;  %391 = vmatpush.msra.mxu0 %v53_v31 }
  0x15   :  { %319 = vmatpush.msrb.mxu3 %v52_v32  ;;  %392 = vmatpush.msra.mxu0 %v52_v32 }
  0x17   :  { %320 = vmatpush.msrb.mxu3 %v51_v41  ;;  %393 = vmatpush.msra.mxu0 %v51_v41 }
  0x85   :  { %v97_v8 = vpop.f32.mrf.mxu0 }
  0x86   :  { %v98_v9 = vadd.f32 %v97_v8, %v60_v7 }
  0x88   :  { %v103_v10 = vmax.f32 %v98_v9, 0.0 }
  0x8a   :  { %124 = vmatpush.msra.mxu1 %v103_v10 }
  0x8b   :  { %v100_v12 = vpop.f32.mrf.mxu2  ;;  %606 = vmatmul.msk.f32.vlgmr.msra.gmra.mxu1 %vm105_vm2, %v768_v11 }
  0x8c   :  { %v101_v13 = vadd.f32 %v100_v12, %v60_v7  ;;  %v58_v12 = vld [vmem:[%s841_s6 + $0x18] sm:$0xff] }
  0x8e   :  { %v104_v14 = vmax.f32 %v101_v13, 0.0  ;;  %v56_v13 = vld [vmem:[%s841_s6 + $0x8] sm:$0xff] }
  0x90   :  { %147 = vmatpush.msrb.mxu2 %v104_v14 }
  0x91   :  { %607 = vmatmul.msk.f32.vlgmr.msrb.gmra.mxu2 %vm105_vm2, %v775_v15 }
 0x108   :  { %v126_v17 = vpop.f32.mrf.mxu1 }
 0x109   :  { %608 = vmatmul.msk.f32.vlgmr.msra.gmra.mxu3 %vm152_vm3, %v126_v17 }
 0x10a   :  { %463 = vmatpush.msra.mxu3 %v54_v30 }
 0x10c   :  { %464 = vmatpush.msra.mxu3 %v53_v31 }
 0x10e   :  { %465 = vmatpush.msra.mxu3 %v52_v32 }
 0x110   :  { %466 = vmatpush.msra.mxu3 %v51_v41 }
 0x114   :  { %v149_v18 = vpop.f32.mrf.mxu2 }
 0x115   :  { %609 = vmatmul.msk.f32.gmra.mxu3 %vm152_vm3, %v149_v18 }
 0x18c   :  { %v176_v20 = vpop.f32.mrf.mxu3 }
 0x18d   :  { %v177_v21 = vadd.f32 %v176_v20, %v61_v19 }
 0x18f   :  { %v182_v22 = vmax.f32 %v177_v21, 0.0 }
 0x191   :  { %v184_v23 = vadd.f32 %v182_v22, %v103_v10 }
 0x193   :  { %201 = vmatpush.msrb.mxu1 %v184_v23 }
 0x194   :  { %610 = vmatmul.msk.f32.vlgmr.msrb.gmra.mxu1 %vm105_vm2, %v768_v11 }
 0x198   :  { %v179_v24 = vpop.f32.mrf.mxu3 }
 0x199   :  { %v180_v25 = vadd.f32 %v179_v24, %v61_v19 }
 0x19b   :  { %v183_v26 = vmax.f32 %v180_v25, 0.0  ;;  %v636_v25 = vld [vmem:[%s842_s7] ss:$0 sm:$0xff] }
 0x19d   :  { %v185_v27 = vadd.f32 %v183_v26, %v104_v14  ;;  %v55_v14 = vld [vmem:[%s841_s6] sm:$0xff] }
 0x19f   :  { %221 = vmatpush.msra.mxu2 %v185_v27 }
 0x1a0   :  { %611 = vmatmul.msk.f32.vlgmr.msra.gmra.mxu2 %vm105_vm2, %v775_v15 }
 0x211   :  { %v203_v28 = vpop.f32.mrf.mxu1 }
 0x212   :  { %612 = vmatmul.msk.f32.vlgmr.msrb.gmra.mxu0 %vm152_vm3, %v203_v28 }
 0x213   :  { %536 = vmatpush.msrb.mxu0 %v54_v30 }
 0x215   :  { %537 = vmatpush.msrb.mxu0 %v53_v31 }
 0x217   :  { %538 = vmatpush.msrb.mxu0 %v52_v32 }
 0x219   :  { %539 = vmatpush.msrb.mxu0 %v51_v41 }
 0x223   :  { %v223_v29 = vpop.f32.mrf.mxu2 }
 0x224   :  { %613 = vmatmul.msk.f32.gmra.mxu0 %vm152_vm3, %v223_v29 }
 0x28f   :  { %v249_v33 = vpop.f32.mrf.mxu0 }
 0x290   :  { %v250_v34 = vadd.f32 %v249_v33, %v61_v19 }
 0x292   :  { %v255_v35 = vmax.f32 %v250_v34, 0.0 }
 0x294   :  { %v257_v36 = vadd.f32 %v255_v35, %v184_v23 }
 0x296   :  { %274 = vmatpush.msra.mxu1 %v257_v36 }
 0x297   :  { %614 = vmatmul.msk.f32.vlgmr.msra.gmra.mxu1 %vm105_vm2, %v768_v11 }
 0x2a1   :  { %v252_v37 = vpop.f32.mrf.mxu0 }
 0x2a2   :  { %v253_v38 = vadd.f32 %v252_v37, %v61_v19 }
 0x2a4   :  { %v256_v39 = vmax.f32 %v253_v38, 0.0 }
 0x2a6   :  { %v258_v40 = vadd.f32 %v256_v39, %v185_v27 }
 0x2a8   :  { %294 = vmatpush.msrb.mxu2 %v258_v40 }
 0x2a9   :  { %615 = vmatmul.msk.f32.vlgmr.msrb.gmra.mxu2 %vm105_vm2, %v775_v15 }
 0x314   :  { %v276_v42 = vpop.f32.mrf.mxu1 }
 0x315   :  { %616 = vmatmul.msk.f32.vlgmr.msrb.gmra.mxu3 %vm152_vm3, %v276_v42 }
 0x32c   :  { %v296_v43 = vpop.f32.mrf.mxu2 }
 0x32d   :  { %617 = vmatmul.msk.f32.gmra.mxu3 %vm152_vm3, %v296_v43 }
 0x398   :  { %v322_v45 = vpop.f32.mrf.mxu3 }
 0x399   :  { %v323_v46 = vadd.f32 %v322_v45, %v62_v44 }
 0x39b   :  { %v328_v47 = vmax.f32 %v323_v46, 0.0 }
 0x39d   :  { %v330_v48 = vadd.f32 %v328_v47, %v257_v36 }
 0x39f   :  { %347 = vmatpush.msrb.mxu1 %v330_v48 }
 0x3a0   :  { %618 = vmatmul.msk.f32.vlgmr.msrb.gmra.mxu1 %vm105_vm2, %v768_v11 }
 0x3b0   :  { %v325_v49 = vpop.f32.mrf.mxu3 }
 0x3b1   :  { %v326_v50 = vadd.f32 %v325_v49, %v62_v44 }
 0x3b3   :  { %v329_v51 = vmax.f32 %v326_v50, 0.0 }
 0x3b5   :  { %v331_v52 = vadd.f32 %v329_v51, %v258_v40 }
 0x3b7   :  { %367 = vmatpush.msra.mxu2 %v331_v52 }
 0x3b8   :  { %619 = vmatmul.msk.f32.vlgmr.msra.gmra.mxu2 %vm105_vm2, %v775_v15 }
 0x41d   :  { %v349_v53 = vpop.f32.mrf.mxu1 }
 0x41e   :  { %620 = vmatmul.msk.f32.vlgmr.msra.gmra.mxu0 %vm152_vm3, %v349_v53 }
 0x43b   :  { %v369_v54 = vpop.f32.mrf.mxu2 }
 0x43c   :  { %621 = vmatmul.msk.f32.gmra.mxu0 %vm152_vm3, %v369_v54 }
 0x49b   :  { %v395_v55 = vpop.f32.mrf.mxu0 }
 0x49c   :  { %v396_v56 = vadd.f32 %v395_v55, %v62_v44 }
 0x49e   :  { %v401_v57 = vmax.f32 %v396_v56, 0.0 }
 0x4a0   :  { %v403_v58 = vadd.f32 %v401_v57, %v330_v48 }
 0x4a2   :  { %420 = vmatpush.msra.mxu1 %v403_v58 }
 0x4a3   :  { %622 = vmatmul.msk.f32.vlgmr.msra.gmra.mxu1 %vm105_vm2, %v768_v11 }
 0x4b9   :  { %v398_v59 = vpop.f32.mrf.mxu0 }
 0x4ba   :  { %v399_v60 = vadd.f32 %v398_v59, %v62_v44 }
 0x4bc   :  { %v402_v61 = vmax.f32 %v399_v60, 0.0 }
 0x4be   :  { %v404_v62 = vadd.f32 %v402_v61, %v331_v52 }
 0x4c0   :  { %440 = vmatpush.msrb.mxu2 %v404_v62 }
 0x4c1   :  { %623 = vmatmul.msk.f32.vlgmr.msrb.gmra.mxu2 %vm105_vm2, %v775_v15 }
 0x520   :  { %v422_v63 = vpop.f32.mrf.mxu1 }
 0x521   :  { %624 = vmatmul.msk.f32.vlgmr.msra.gmra.mxu3 %vm152_vm3, %v422_v63 }
 0x544   :  { %v442_v0 = vpop.f32.mrf.mxu2 }
 0x545   :  { %625 = vmatmul.msk.f32.gmra.mxu3 %vm152_vm3, %v442_v0 }
 0x5a4   :  { %v468_v1 = vpop.f32.mrf.mxu3 }
 0x5a5   :  { %v469_v2 = vadd.f32 %v468_v1, %v62_v44 }
 0x5a7   :  { %v474_v3 = vmax.f32 %v469_v2, 0.0 }
 0x5a9   :  { %v476_v4 = vadd.f32 %v474_v3, %v403_v58 }
 0x5ab   :  { %493 = vmatpush.msrb.mxu1 %v476_v4 }
 0x5ac   :  { %626 = vmatmul.msk.f32.vlgmr.msrb.gmra.mxu1 %vm105_vm2, %v768_v11  ;;  %v57_v11 = vld [vmem:[%s841_s6 + $0x10] sm:$0xff]  ;;  %s692_s6 = smov [#allocation5]  }
 0x5ad   :  { %574 = vmatpush.msra.mxu1 %v58_v12  ;;  %s590_s14 = sshll.u32 %s692_s6, 4  ;;  %s591_s14 = int_to_ptr.vmem [resolvable:$true] %s590_s14 }
 0x5af   :  { %575 = vmatpush.msra.mxu1 %v57_v11 }
 0x5b1   :  { %576 = vmatpush.msra.mxu1 %v56_v13 }
 0x5b3   :  { %577 = vmatpush.msra.mxu1 %v55_v14 }
 0x5c8   :  { %v471_v5 = vpop.f32.mrf.mxu3 }
 0x5c9   :  { %v472_v6 = vadd.f32 %v471_v5, %v62_v44 }
 0x5cb   :  { %v475_v7 = vmax.f32 %v472_v6, 0.0 }
 0x5cd   :  { %v477_v8 = vadd.f32 %v475_v7, %v404_v62 }
 0x5cf   :  { %513 = vmatpush.msra.mxu2 %v477_v8 }
 0x5d0   :  { %627 = vmatmul.msk.f32.vlgmr.msra.gmra.mxu2 %vm105_vm2, %v775_v15 }
 0x629   :  { %v495_v9 = vpop.f32.mrf.mxu1 }
 0x62a   :  { %628 = vmatmul.msk.f32.vlgmr.msrb.gmra.mxu0 %vm152_vm3, %v495_v9 }
 0x653   :  { %v515_v10 = vpop.f32.mrf.mxu2 }
 0x654   :  { %629 = vmatmul.msk.f32.gmra.mxu0 %vm152_vm3, %v515_v10 }
 0x6a7   :  { %v541_v15 = vpop.f32.mrf.mxu0 }
 0x6a8   :  { %v542_v16 = vadd.f32 %v541_v15, %v62_v44 }
 0x6aa   :  { %v547_v19 = vmax.f32 %v542_v16, 0.0 }
 0x6ac   :  { %v549_v22 = vadd.f32 %v547_v19, %v476_v4 }
 0x6d1   :  { %v544_v17 = vpop.f32.mrf.mxu0 }
 0x6d2   :  { %v545_v18 = vadd.f32 %v544_v17, %v62_v44 }
 0x6d4   :  { %v548_v20 = vmax.f32 %v545_v18, 0.0 }
 0x6d6   :  { %v550_v21 = vadd.f32 %v548_v20, %v477_v8 }
 0x6d8   :  { %v552_v23 = vrot.slane %v550_v21, 7 }
 0x6da   :  { %v555_v24 = vsel %vm554_vm4, %v549_v22, %v552_v23 }
 0x6db   :  { %630 = vmatmul.msk.f32.vlgmr.msra.gmra.mxu1 %vm152_vm3, %v555_v24 }
 0x758   :  { %v579_v26 = vpop.f32.mrf.mxu1 }
 0x759   :  { %v580_v27 = vadd.f32 %v636_v25, %v579_v26 }
 0x75b   :  { %v582_v28 = vmax.f32 %v580_v27, 0.0 }
 0x75d   :  { %584 = vst.msk [vmem:[#allocation5] sm:$0x3] %vm583_vm5, %v582_v28 }
 0x75e   :  { %595 = dma.vmem_to_hbm [thread:$0]  %s591_s14, 32, %s593_s16, [#allocation4]  }
 0x75f   :  { %687 = dma.done.wait [#allocation4], 32  }
 0x760   :  { %688 = vsyncadd [#allocation4], 4294967264 }
 0x761   :  { %600 = vsyncpa [#allocation3], 1 }
 0x762   :  { %601 = vsyncpa [#allocation4], 1 }

</bundles_post_ra>
